<compile_context>
chip_gen: v6e
topology: v6e:2x2x1
jax: 0.10.0
libtpu: 0.0.40
codegen_flags: <defaults>
</compile_context>

<pallas_src>
import functools

import jax
import jax.numpy as jnp
from jax.experimental import pallas as pl
from jax.experimental.pallas import tpu as pltpu


def mha_kernel(qkv_ref, w_ref, b_ref, o_ref, *, n_heads, d_k, matmul_dtype):
    # qkv_ref: (3, bb, S, d_model)   stacked q/k/v activations (one DMA)
    # w_ref:   (3, H, d_model, d_k)  per-head projection weights (scale folded in q)
    # b_ref:   (3, H, 1, d_k)        per-head projection biases
    # o_ref:   (bb, 1, S*A)          lane-dense output slab
    _, bb, S, d_model = qkv_ref.shape
    H = n_heads
    A = H * d_k
    BH = bb * H

    def proj(j):
        # Project stream j (0=q, 1=k, 2=v) directly into per-head layout:
        # batched matmul over bb*H "head rows" -> output is already (bb*H, S, d_k),
        # so no head-split relayout is needed afterwards.
        x = qkv_ref[j]                                               # (bb, S, d_model)
        xb = jnp.broadcast_to(x[:, None], (bb, H, S, d_model)).reshape(BH, S, d_model)
        w = jnp.broadcast_to(w_ref[j][None], (bb, H, d_model, d_k)).reshape(BH, d_model, d_k)
        b = jnp.broadcast_to(b_ref[j][None], (bb, H, 1, d_k)).reshape(BH, 1, d_k)
        if matmul_dtype is not None:
            xb = xb.astype(matmul_dtype)
            w = w.astype(matmul_dtype)
        y = jnp.einsum('nsd,ndk->nsk', xb, w, preferred_element_type=jnp.float32)
        return y + b                                                 # (bb*H, S, d_k) f32

    # 1/sqrt(d_k) is pre-folded into w_ref[0]/b_ref[0] on the host.
    qh = proj(0)
    kh = proj(1)
    vh = proj(2)

    # ---- attention, batched over all bb*H heads (single leading batch dim) ------
    if matmul_dtype is not None:
        s_lhs, s_rhs = qh.astype(matmul_dtype), kh.astype(matmul_dtype)
    else:
        s_lhs, s_rhs = qh, kh
    s = jnp.einsum('hqd,hkd->hqk', s_lhs, s_rhs,
                   preferred_element_type=jnp.float32)               # (bb*H, S, S)
    # Row-wise max subtraction: equivalent to the reference's single global-max
    # subtraction (softmax is shift-invariant per row).
    s = s - jnp.max(s, axis=-1, keepdims=True)
    e = jnp.exp(s)
    inv = pl.reciprocal(jnp.sum(e, axis=-1, keepdims=True), approx=False)
    p = e * inv                                                      # softmax, f32
    # TODO(synk): optional `mask` argument (masked_fill -inf + NaN->0) not
    # implemented; reference default (mask=None) is reproduced exactly.

    if matmul_dtype is not None:
        p_m, v_m = p.astype(matmul_dtype), vh.astype(matmul_dtype)
    else:
        p_m, v_m = p, vh
    ctx = jnp.einsum('hqk,hkd->hqd', p_m, v_m,
                     preferred_element_type=jnp.float32)             # (bb*H, S, d_k)

    # ---- head merge + single lane-dense (>=128-multiple) store ------------------
    ctx4 = ctx.reshape(bb, H, S, d_k)
    out = jnp.concatenate([ctx4[:, h] for h in range(H)], axis=-1)   # (bb, S, A)
    o_ref[...] = out.reshape(bb, 1, S * A).astype(o_ref.dtype)


def prepare_qkv_params(params, n_heads):
    """Host-side, once-per-model weight prep (hoisted out of the per-call path).

    Folds the 1/sqrt(d_k) attention scale into the query projection and lays the
    three projections out per head:
      wqkv: (3, H, d_model, d_k),  bqkv: (3, H, 1, d_k)
    """
    wq, bq, wk, bk, wv, bv = params
    d_model, attention_d = wq.shape
    d_k = attention_d // n_heads
    scale = 1.0 / (d_k ** 0.5)

    def per_head(w):  # (d_model, A) -> (H, d_model, d_k); host-side transpose is free
        return w.reshape(d_model, n_heads, d_k).transpose(1, 0, 2)

    wqkv = jnp.stack([per_head(wq * scale), per_head(wk), per_head(wv)], axis=0)
    bqkv = jnp.stack([bq * scale, bk, bv], axis=0).reshape(3, n_heads, 1, d_k)
    return wqkv, bqkv


def multi_head_attention(q, k, v, wqkv, bqkv, *, n_heads,
                         batch_block=None, matmul_dtype=None):
    """q, k, v: (B, S, d_model) float32.  wqkv/bqkv from prepare_qkv_params().
    Returns (B, S, attention_d).  matmul_dtype=jnp.bfloat16 feeds the MXU bf16
    operands (recommended on v6e/v7x once S/d_model grow); softmax stays f32."""
    B, S, d_model = q.shape
    H = n_heads
    d_k = wqkv.shape[-1]
    A = H * d_k

    # Even "parallel" grid extent by default so v7x's two TensorCores both work.
    if batch_block is None:
        batch_block = B // 2 if (B >= 2 and B % 2 == 0) else B
    bb = batch_block
    assert B % bb == 0, "batch must be divisible by batch_block"

    # One activation block/DMA per grid step (for repeated calls / self-attention,
    # this stack can be hoisted or replaced by a single shared tensor).
    qkv = jnp.stack([q, k, v], axis=0)                                # (3, B, S, d_model)

    kernel = functools.partial(mha_kernel, n_heads=H, d_k=d_k,
                               matmul_dtype=matmul_dtype)

    # TODO(synk): for large S, tile the KV axis flash-style (online softmax, an
    # "arbitrary" k grid axis) and re-derive tile sizes against v7x's 64 MiB VMEM
    # with an explicit vmem_limit_bytes; unnecessary at these shapes.
    out = pl.pallas_call(
        kernel,
        out_shape=jax.ShapeDtypeStruct((B, 1, S * A), jnp.float32),
        grid=(B // bb,),
        in_specs=[
            pl.BlockSpec((3, bb, S, d_model), lambda i: (0, i, 0, 0)),
            pl.BlockSpec((3, H, d_model, d_k), lambda i: (0, 0, 0, 0)),
            pl.BlockSpec((3, H, 1, d_k), lambda i: (0, 0, 0, 0)),
        ],
        out_specs=pl.BlockSpec((bb, 1, S * A), lambda i: (i, 0, 0)),
        compiler_params=pltpu.CompilerParams(
            dimension_semantics=("parallel",)),
    )(qkv, wqkv, bqkv)
    # Row-major metadata reshape back to (B, S, A) -- free in XLA.
    return out.reshape(B, S, A)


def reference_mha(q, k, v, params, *, n_heads):
    """Plain-JAX replica of the PyTorch forward (mask=None, kq_same=False)."""
    wq, bq, wk, bk, wv, bv = params
    B, S, _ = q.shape
    attention_d = wq.shape[1]
    d_k = attention_d // n_heads

    def split(x):  # (B, S, A) -> (B, h, S, d_k)
        return x.reshape(B, S, n_heads, d_k).transpose(0, 2, 1, 3)

    qh = split(q @ wq + bq)
    kh = split(k @ wk + bk)
    vh = split(v @ wv + bv)

    scores = jnp.einsum("bhqd,bhkd->bhqk", qh, kh) / (d_k ** 0.5)
    scores = scores - jnp.max(scores)            # global max, as in the reference
    scores = jax.nn.softmax(scores, axis=-1)
    out = jnp.einsum("bhqk,bhkd->bhqd", scores, vh)
    return out.transpose(0, 2, 1, 3).reshape(B, S, attention_d)


def init_params(key, d_model, attention_d):
    # Deterministic init mimicking nn.Linear's uniform(-1/sqrt(in), 1/sqrt(in)).
    ks = jax.random.split(key, 6)
    bound = 1.0 / (d_model ** 0.5)
    u = lambda k, shape: jax.random.uniform(k, shape, jnp.float32, -bound, bound)
    wq = u(ks[0], (d_model, attention_d)); bq = u(ks[1], (attention_d,))
    wk = u(ks[2], (d_model, attention_d)); bk = u(ks[3], (attention_d,))
    wv = u(ks[4], (d_model, attention_d)); bv = u(ks[5], (attention_d,))
    return (wq, bq, wk, bk, wv, bv)


if __name__ == "__main__":
    B, S, d_model, n_heads = 2, 8, 32, 4
    attention_d = d_model  # attention_d < 0 in the module -> defaults to d_model

    key = jax.random.PRNGKey(0)
    kq, kk, kv, kp = jax.random.split(key, 4)
    q = jax.random.normal(kq, (B, S, d_model), jnp.float32)
    k = jax.random.normal(kk, (B, S, d_model), jnp.float32)
    v = jax.random.normal(kv, (B, S, d_model), jnp.float32)
    params = init_params(kp, d_model, attention_d)

    # Hoisted one-time weight prep (not paid per forward call).
    wqkv, bqkv = prepare_qkv_params(params, n_heads)

    out = multi_head_attention(q, k, v, wqkv, bqkv, n_heads=n_heads)
    out = jax.block_until_ready(out)

    ref = reference_mha(q, k, v, params, n_heads=n_heads)
    assert out.shape == (B, S, attention_d)
    # Exact reciprocal in the kernel -> tight tolerance vs. the reference.
    assert jnp.allclose(out, ref, atol=1e-4, rtol=1e-4), "mismatch vs reference"

    print("KERNEL_OK")
</pallas_src>

<mosaic_0001>
module attributes {stable_mosaic.version = 11 : i64} {
  func.func @mha_kernel(%arg0: i32, %arg1: memref<3x1x8x32xf32, #tpu.memory_space<vmem>>, %arg2: memref<3x4x32x8xf32, #tpu.memory_space<vmem>>, %arg3: memref<3x4x1x8xf32, #tpu.memory_space<vmem>>, %arg4: memref<1x1x256xf32, #tpu.memory_space<vmem>>) attributes {dimension_semantics = [#tpu.dimension_semantics<parallel>], iteration_bounds = array<i64: 2>, scalar_prefetch = 0 : i64, scratch_operands = 0 : i64, tpu.core_type = #tpu.core_type<tc>, window_params = [{transform_indices = @transform_0, window_bounds = array<i64: 3, 1, 8, 32>}, {pipeline_mode = #tpu.pipeline_mode<synchronous>, transform_indices = @transform_1, window_bounds = array<i64: 3, 4, 32, 8>}, {pipeline_mode = #tpu.pipeline_mode<synchronous>, transform_indices = @transform_2, window_bounds = array<i64: 3, 4, 1, 8>}, {transform_indices = @transform_3, window_bounds = array<i64: 1, 1, 256>}]} {
    %c0 = arith.constant 0 : index
    %c0_0 = arith.constant 0 : index
    %c0_1 = arith.constant 0 : index
    %c0_2 = arith.constant 0 : index
    %0 = vector.load %arg1[%c0, %c0_0, %c0_1, %c0_2] : memref<3x1x8x32xf32, #tpu.memory_space<vmem>>, vector<1x1x8x32xf32>
    %1 = vector.shape_cast %0 : vector<1x1x8x32xf32> to vector<1x8x32xf32>
    %2 = vector.shape_cast %1 : vector<1x8x32xf32> to vector<1x1x8x32xf32>
    %3 = vector.shape_cast %2 : vector<1x1x8x32xf32> to vector<1x1x8x32xf32>
    %4 = vector.broadcast %3 : vector<1x1x8x32xf32> to vector<1x4x8x32xf32>
    %5 = vector.shape_cast %4 : vector<1x4x8x32xf32> to vector<4x8x32xf32>
    %c0_3 = arith.constant 0 : index
    %c0_4 = arith.constant 0 : index
    %c0_5 = arith.constant 0 : index
    %c0_6 = arith.constant 0 : index
    %6 = vector.load %arg2[%c0_3, %c0_4, %c0_5, %c0_6] : memref<3x4x32x8xf32, #tpu.memory_space<vmem>>, vector<1x4x32x8xf32>
    %7 = vector.shape_cast %6 : vector<1x4x32x8xf32> to vector<4x32x8xf32>
    %8 = vector.shape_cast %7 : vector<4x32x8xf32> to vector<1x4x32x8xf32>
    %9 = vector.shape_cast %8 : vector<1x4x32x8xf32> to vector<4x32x8xf32>
    %c0_7 = arith.constant 0 : index
    %c0_8 = arith.constant 0 : index
    %c0_9 = arith.constant 0 : index
    %c0_10 = arith.constant 0 : index
    %10 = vector.load %arg3[%c0_7, %c0_8, %c0_9, %c0_10] : memref<3x4x1x8xf32, #tpu.memory_space<vmem>>, vector<1x4x1x8xf32>
    %11 = vector.shape_cast %10 : vector<1x4x1x8xf32> to vector<4x1x8xf32>
    %12 = vector.shape_cast %11 : vector<4x1x8xf32> to vector<1x4x1x8xf32>
    %13 = vector.shape_cast %12 : vector<1x4x1x8xf32> to vector<4x1x8xf32>
    "tpu.trace_start"() <{level = 10 : i32, message = "nsd,ndk->nsk"}> : () -> ()
    %cst = arith.constant dense<0.000000e+00> : vector<4x8x8xf32>
    %14 = tpu.matmul %5, %9, %cst {dimension_numbers = #tpu.dot_dimension_numbers<[2], [1], [1], [2], [0, 0, 0, 1, 1, 2], [0], [0]>} : vector<4x8x32xf32>, vector<4x32x8xf32>, vector<4x8x8xf32> -> vector<4x8x8xf32>
    "tpu.trace_stop"() : () -> ()
    %15 = vector.broadcast %13 : vector<4x1x8xf32> to vector<4x8x8xf32>
    %16 = arith.addf %14, %15 : vector<4x8x8xf32>
    %c1 = arith.constant 1 : index
    %c0_11 = arith.constant 0 : index
    %c0_12 = arith.constant 0 : index
    %c0_13 = arith.constant 0 : index
    %17 = vector.load %arg1[%c1, %c0_11, %c0_12, %c0_13] : memref<3x1x8x32xf32, #tpu.memory_space<vmem>>, vector<1x1x8x32xf32>
    %18 = vector.shape_cast %17 : vector<1x1x8x32xf32> to vector<1x8x32xf32>
    %19 = vector.shape_cast %18 : vector<1x8x32xf32> to vector<1x1x8x32xf32>
    %20 = vector.shape_cast %19 : vector<1x1x8x32xf32> to vector<1x1x8x32xf32>
    %21 = vector.broadcast %20 : vector<1x1x8x32xf32> to vector<1x4x8x32xf32>
    %22 = vector.shape_cast %21 : vector<1x4x8x32xf32> to vector<4x8x32xf32>
    %c1_14 = arith.constant 1 : index
    %c0_15 = arith.constant 0 : index
    %c0_16 = arith.constant 0 : index
    %c0_17 = arith.constant 0 : index
    %23 = vector.load %arg2[%c1_14, %c0_15, %c0_16, %c0_17] : memref<3x4x32x8xf32, #tpu.memory_space<vmem>>, vector<1x4x32x8xf32>
    %24 = vector.shape_cast %23 : vector<1x4x32x8xf32> to vector<4x32x8xf32>
    %25 = vector.shape_cast %24 : vector<4x32x8xf32> to vector<1x4x32x8xf32>
    %26 = vector.shape_cast %25 : vector<1x4x32x8xf32> to vector<4x32x8xf32>
    %c1_18 = arith.constant 1 : index
    %c0_19 = arith.constant 0 : index
    %c0_20 = arith.constant 0 : index
    %c0_21 = arith.constant 0 : index
    %27 = vector.load %arg3[%c1_18, %c0_19, %c0_20, %c0_21] : memref<3x4x1x8xf32, #tpu.memory_space<vmem>>, vector<1x4x1x8xf32>
    %28 = vector.shape_cast %27 : vector<1x4x1x8xf32> to vector<4x1x8xf32>
    %29 = vector.shape_cast %28 : vector<4x1x8xf32> to vector<1x4x1x8xf32>
    %30 = vector.shape_cast %29 : vector<1x4x1x8xf32> to vector<4x1x8xf32>
    "tpu.trace_start"() <{level = 10 : i32, message = "nsd,ndk->nsk"}> : () -> ()
    %cst_22 = arith.constant dense<0.000000e+00> : vector<4x8x8xf32>
    %31 = tpu.matmul %22, %26, %cst_22 {dimension_numbers = #tpu.dot_dimension_numbers<[2], [1], [1], [2], [0, 0, 0, 1, 1, 2], [0], [0]>} : vector<4x8x32xf32>, vector<4x32x8xf32>, vector<4x8x8xf32> -> vector<4x8x8xf32>
    "tpu.trace_stop"() : () -> ()
    %32 = vector.broadcast %30 : vector<4x1x8xf32> to vector<4x8x8xf32>
    %33 = arith.addf %31, %32 : vector<4x8x8xf32>
    %c2 = arith.constant 2 : index
    %c0_23 = arith.constant 0 : index
    %c0_24 = arith.constant 0 : index
    %c0_25 = arith.constant 0 : index
    %34 = vector.load %arg1[%c2, %c0_23, %c0_24, %c0_25] : memref<3x1x8x32xf32, #tpu.memory_space<vmem>>, vector<1x1x8x32xf32>
    %35 = vector.shape_cast %34 : vector<1x1x8x32xf32> to vector<1x8x32xf32>
    %36 = vector.shape_cast %35 : vector<1x8x32xf32> to vector<1x1x8x32xf32>
    %37 = vector.shape_cast %36 : vector<1x1x8x32xf32> to vector<1x1x8x32xf32>
    %38 = vector.broadcast %37 : vector<1x1x8x32xf32> to vector<1x4x8x32xf32>
    %39 = vector.shape_cast %38 : vector<1x4x8x32xf32> to vector<4x8x32xf32>
    %c2_26 = arith.constant 2 : index
    %c0_27 = arith.constant 0 : index
    %c0_28 = arith.constant 0 : index
    %c0_29 = arith.constant 0 : index
    %40 = vector.load %arg2[%c2_26, %c0_27, %c0_28, %c0_29] : memref<3x4x32x8xf32, #tpu.memory_space<vmem>>, vector<1x4x32x8xf32>
    %41 = vector.shape_cast %40 : vector<1x4x32x8xf32> to vector<4x32x8xf32>
    %42 = vector.shape_cast %41 : vector<4x32x8xf32> to vector<1x4x32x8xf32>
    %43 = vector.shape_cast %42 : vector<1x4x32x8xf32> to vector<4x32x8xf32>
    %c2_30 = arith.constant 2 : index
    %c0_31 = arith.constant 0 : index
    %c0_32 = arith.constant 0 : index
    %c0_33 = arith.constant 0 : index
    %44 = vector.load %arg3[%c2_30, %c0_31, %c0_32, %c0_33] : memref<3x4x1x8xf32, #tpu.memory_space<vmem>>, vector<1x4x1x8xf32>
    %45 = vector.shape_cast %44 : vector<1x4x1x8xf32> to vector<4x1x8xf32>
    %46 = vector.shape_cast %45 : vector<4x1x8xf32> to vector<1x4x1x8xf32>
    %47 = vector.shape_cast %46 : vector<1x4x1x8xf32> to vector<4x1x8xf32>
    "tpu.trace_start"() <{level = 10 : i32, message = "nsd,ndk->nsk"}> : () -> ()
    %cst_34 = arith.constant dense<0.000000e+00> : vector<4x8x8xf32>
    %48 = tpu.matmul %39, %43, %cst_34 {dimension_numbers = #tpu.dot_dimension_numbers<[2], [1], [1], [2], [0, 0, 0, 1, 1, 2], [0], [0]>} : vector<4x8x32xf32>, vector<4x32x8xf32>, vector<4x8x8xf32> -> vector<4x8x8xf32>
    "tpu.trace_stop"() : () -> ()
    %49 = vector.broadcast %47 : vector<4x1x8xf32> to vector<4x8x8xf32>
    %50 = arith.addf %48, %49 : vector<4x8x8xf32>
    "tpu.trace_start"() <{level = 10 : i32, message = "hqd,hkd->hqk"}> : () -> ()
    %cst_35 = arith.constant dense<0.000000e+00> : vector<4x8x8xf32>
    %51 = tpu.matmul %16, %33, %cst_35 {dimension_numbers = #tpu.dot_dimension_numbers<[2], [2], [1], [1], [0, 0, 0, 1, 1, 1], [0], [0]>} : vector<4x8x8xf32>, vector<4x8x8xf32>, vector<4x8x8xf32> -> vector<4x8x8xf32>
    "tpu.trace_stop"() : () -> ()
    %cst_36 = arith.constant dense<0xFF800000> : vector<4x8xf32>
    %52 = vector.multi_reduction <maximumf>, %51, %cst_36 [2] : vector<4x8x8xf32> to vector<4x8xf32>
    %53 = vector.shape_cast %52 : vector<4x8xf32> to vector<4x8x1xf32>
    %54 = vector.broadcast %53 : vector<4x8x1xf32> to vector<4x8x8xf32>
    %55 = arith.subf %51, %54 : vector<4x8x8xf32>
    %56 = math.exp %55 : vector<4x8x8xf32>
    %cst_37 = arith.constant dense<0.000000e+00> : vector<4x8xf32>
    %57 = vector.multi_reduction <add>, %56, %cst_37 [2] : vector<4x8x8xf32> to vector<4x8xf32>
    %58 = vector.shape_cast %57 : vector<4x8xf32> to vector<4x8x1xf32>
    %59 = tpu.reciprocal %58 : vector<4x8x1xf32> -> vector<4x8x1xf32>
    %60 = vector.broadcast %59 : vector<4x8x1xf32> to vector<4x8x8xf32>
    %61 = arith.mulf %56, %60 : vector<4x8x8xf32>
    "tpu.trace_start"() <{level = 10 : i32, message = "hqk,hkd->hqd"}> : () -> ()
    %cst_38 = arith.constant dense<0.000000e+00> : vector<4x8x8xf32>
    %62 = tpu.matmul %61, %50, %cst_38 {dimension_numbers = #tpu.dot_dimension_numbers<[2], [1], [1], [2], [0, 0, 0, 1, 1, 2], [0], [0]>} : vector<4x8x8xf32>, vector<4x8x8xf32>, vector<4x8x8xf32> -> vector<4x8x8xf32>
    "tpu.trace_stop"() : () -> ()
    %63 = vector.shape_cast %62 : vector<4x8x8xf32> to vector<1x4x8x8xf32>
    %64 = vector.extract_strided_slice %63 {offsets = [0, 0, 0, 0], sizes = [1, 1, 8, 8], strides = [1, 1, 1, 1]} : vector<1x4x8x8xf32> to vector<1x1x8x8xf32>
    %65 = vector.shape_cast %64 : vector<1x1x8x8xf32> to vector<1x8x8xf32>
    %66 = vector.extract_strided_slice %63 {offsets = [0, 1, 0, 0], sizes = [1, 1, 8, 8], strides = [1, 1, 1, 1]} : vector<1x4x8x8xf32> to vector<1x1x8x8xf32>
    %67 = vector.shape_cast %66 : vector<1x1x8x8xf32> to vector<1x8x8xf32>
    %68 = vector.extract_strided_slice %63 {offsets = [0, 2, 0, 0], sizes = [1, 1, 8, 8], strides = [1, 1, 1, 1]} : vector<1x4x8x8xf32> to vector<1x1x8x8xf32>
    %69 = vector.shape_cast %68 : vector<1x1x8x8xf32> to vector<1x8x8xf32>
    %70 = vector.extract_strided_slice %63 {offsets = [0, 3, 0, 0], sizes = [1, 1, 8, 8], strides = [1, 1, 1, 1]} : vector<1x4x8x8xf32> to vector<1x1x8x8xf32>
    %71 = vector.shape_cast %70 : vector<1x1x8x8xf32> to vector<1x8x8xf32>
    %72 = tpu.concatenate %65, %67, %69, %71 in 2 : vector<1x8x8xf32>, vector<1x8x8xf32>, vector<1x8x8xf32>, vector<1x8x8xf32> -> vector<1x8x32xf32>
    %73 = vector.shape_cast %72 : vector<1x8x32xf32> to vector<1x1x256xf32>
    %c0_39 = arith.constant 0 : index
    %c0_40 = arith.constant 0 : index
    %c0_41 = arith.constant 0 : index
    %74 = vector.load %arg4[%c0_39, %c0_40, %c0_41] : memref<1x1x256xf32, #tpu.memory_space<vmem>>, vector<1x1x256xf32>
    tpu.vector_store %arg4[%c0_39, %c0_40, %c0_41], %73 {strides = array<i32>} : memref<1x1x256xf32, #tpu.memory_space<vmem>>, vector<1x1x256xf32>,
    return
  }
  func.func @transform_0(%arg0: i32) -> (i32, i32, i32, i32) {
    %c0_i32 = arith.constant 0 : i32
    %c0_i32_0 = arith.constant 0 : i32
    %c0_i32_1 = arith.constant 0 : i32
    %c0_i32_2 = arith.constant 0 : i32
    return %c0_i32, %arg0, %c0_i32_0, %c0_i32_1 : i32, i32, i32, i32
  }
  func.func @transform_1(%arg0: i32) -> (i32, i32, i32, i32) {
    %c0_i32 = arith.constant 0 : i32
    %c0_i32_0 = arith.constant 0 : i32
    %c0_i32_1 = arith.constant 0 : i32
    %c0_i32_2 = arith.constant 0 : i32
    %c0_i32_3 = arith.constant 0 : i32
    return %c0_i32, %c0_i32_0, %c0_i32_1, %c0_i32_2 : i32, i32, i32, i32
  }
  func.func @transform_2(%arg0: i32) -> (i32, i32, i32, i32) {
    %c0_i32 = arith.constant 0 : i32
    %c0_i32_0 = arith.constant 0 : i32
    %c0_i32_1 = arith.constant 0 : i32
    %c0_i32_2 = arith.constant 0 : i32
    %c0_i32_3 = arith.constant 0 : i32
    return %c0_i32, %c0_i32_0, %c0_i32_1, %c0_i32_2 : i32, i32, i32, i32
  }
  func.func @transform_3(%arg0: i32) -> (i32, i32, i32) {
    %c0_i32 = arith.constant 0 : i32
    %c0_i32_0 = arith.constant 0 : i32
    %c0_i32_1 = arith.constant 0 : i32
    return %arg0, %c0_i32, %c0_i32_0 : i32, i32, i32
  }
}

</mosaic_0001>

<bundles_post_ra>
// kernel: tpu_custom_call.1
= control target key start
LH: loop header
LB: loop body
LE: loop exit
PB: predicated region body
PF: predicated region fallthrough
CT: control target
= control target key end

     0   :  { %8 = vsyncpa [#allocation4], 0  ;;  %s2968_s0 = inlined_call_operand.vmem [shape: f32[3,2,8,32], index: 0, kind: input, shape index: {}]   ;;  %s2969_s1 = inlined_call_operand.vmem [shape: f32[3,4,32,8], index: 1, kind: input, shape index: {}]   ;;  %s2970_s2 = inlined_call_operand.vmem [shape: f32[3,4,1,8], index: 2, kind: input, shape index: {}]   ;;  %s2971_s3 = inlined_call_operand.hbm [shape: f32[2,1,256], index: 3, kind: output, shape index: {}]  }
   0x1   :  { %10 = vsyncpa [#allocation4 + $0x1], 0  ;;  %s2545_s12 = smov 0   ;;  %s2547_s13 = smov 0  }
   0x2   :  { %s2549_s14 = smov 0   ;;  %s2551_s15 = smov 0  }
   0x3 LB: > { %s2044_s16 = sadd.s32 4294967295, %s2511_s15   ;;  %s2045_s17 = sadd.s32 4294967294, %s2511_s15   ;;  %s2511_s15 = sphi %s2551_s15, %s2979_s15   ;;  %s2507_s14 = sphi %s2549_s14, %s2978_s14   ;;  %s2503_s13 = sphi %s2547_s13, %s2977_s13   ;;  %s2499_s12 = sphi %s2545_s12, %s2976_s12  }
   0x4   : > { %s2568_s18 = sadd.s32 1, %s2511_s15   ;;  %s23_s19 = sadd.s32 1, %s2507_s14 }
   0x5   : > { %s20_s20 = ssub.s32 %s2511_s15, %s2568_s18  ;;  %p30_p0 = scmp.ne.s32.totalorder %s2507_s14, %s2503_s13 }
   0x6   : > { %p21_p1 = scmp.eq.s32.totalorder %s20_s20, 0  ;;  %p31_p2 = scmp.eq.s32.totalorder %s2511_s15, 0 }
   0x7   : > { %p102_p3 = scmp.eq.s32.totalorder %s2044_s16, 1  ;;  %p107_p4 = scmp.ne.s32.totalorder %s2503_s13, %s2499_s12 }
   0x8   : > { %s2581_s21 = scalar_select %p21_p1, %s2507_s14, %s23_s19  }
   0x9   : > { %p32_p5 = por %p31_p2, %p30_p0  ;;  %p2583_p6 = por %p102_p3, %p30_p0 }
   0xa   : > { %p108_p7 = scmp.eq.s32.totalorder %s2045_s17, 1  ;;  %p2972_p9 = scmp.ge.s32.totalorder %s2511_s15, 2 }
   0xc   : > { %p2587_p8 = por %p108_p7, %p107_p4  ;;  %130 = sbr.rel (%p2972_p9) target bundleno = 23 (0x17), region = 24 }
  0x11   : > { %133 = sbr.rel (!%p32_p5) target bundleno = 23 (0x17), region = 28  ;;  %s135_s24 = sand.u32 (%p32_p5), 1, %s2507_s14  }
  0x12   : > { %s2048_s25 = sshll.u32 (%p32_p5), %s2511_s15, 3  ;;  %s2383_s26 = smul.u32 (%p32_p5), 24, %s135_s24 }
  0x13   : > { %s139_s29 = scalar_lea.vmem (%p32_p5), %s2968_s0, %s2048_s25 }
  0x14   : > { %v172_v0 = vld [vmem:[%s139_s29] sm:$0xff] (%p32_p5)  ;;  %v174_v1 = vld [vmem:[%s139_s29 + $0x10] sm:$0xff] (%p32_p5)  ;;  %s137_s30 = scalar_lea.vmem (%p32_p5), [#allocation2], %s2383_s26 }
  0x15   : > { %v176_v2 = vld [vmem:[%s139_s29 + $0x20] sm:$0xff] (%p32_p5)  ;;  %173 = vst [vmem:[%s137_s30] sm:$0xff] (%p32_p5), %v172_v0  ;;  %175 = vst [vmem:[%s137_s30 + $0x8] sm:$0xff] (%p32_p5), %v174_v1 }
  0x16   : > { %177 = vst [vmem:[%s137_s30 + $0x10] sm:$0xff] %v176_v2 }
  0x17 PF: > { %p2049_p10 = scmp.ge.s32.totalorder %s2511_s15, 1  ;;  %p182_p11 = scmp.lt.s32.totalorder %s2511_s15, 3 }
  0x19   : > { %p183_p12 = pnand %p2049_p10, %p182_p11 }
  0x1a   : > { %s2608_s8 = sand.u32 (!%p183_p12), 1, %s2503_s13   ;;  %s2515_s17 = smov (!%p183_p12), 8  }
  0x1b   : > { %186 = sbr.rel (%p183_p12) target bundleno = 1239 (0x4d7), region = 66  ;;  %s2520_s20 = smov (!%p183_p12), 32  }
  0x1c   : > { %s2384_s19 = smul.u32 (!%p183_p12), 24, %s2608_s8  ;;  %s2521_s24 = smov (!%p183_p12), 64  }
  0x1d   : > { %s2522_s25 = smov (!%p183_p12), 96   ;;  %s2050_s26 = sshll.u32 (!%p183_p12), %s2608_s8, 1 }
  0x1e   : > { %s2635_s4 = scalar_lea.vmem (!%p183_p12), [#allocation2], %s2384_s19  ;;  %s2516_s19 = smov (!%p183_p12), 16  }
  0x1f   : > { %s2134_s27 = sshll.u32 (!%p183_p12), %s2044_s16, 5  ;;  %s211_s28 = scalar_lea.vmem (!%p183_p12), [#allocation3], %s2050_s26 }
  0x20   : > { %v216_v3 = vld [vmem:[%s2969_s1 + $0x18] sm:$0xff]  ;;  %v2513_v5 = vmov 0.0   ;;  %v215_v6 = vld [vmem:[%s2969_s1 + $0x10] sm:$0xff]  ;;  %v214_v8 = vld [vmem:[%s2969_s1 + $0x8] sm:$0xff]  ;;  %vm257_vm0 = vcmask 261120   ;;  %vm2514_vm1 = vmmov 0   ;;  %s1978_s6 = scalar_lea.hbm %s2971_s3, %s2134_s27 }
  0x21   : > { %v220_v4 = vld [vmem:[%s2969_s1 + $0x38] sm:$0xff]  ;;  %2211 = vmatprep.subr.mxu0 %v2513_v5  ;;  %2222 = vmatprep.subr.mxu1 %v2513_v5  ;;  %v219_v7 = vld [vmem:[%s2969_s1 + $0x30] sm:$0xff]  ;;  %v218_v9 = vld [vmem:[%s2969_s1 + $0x28] sm:$0xff]  ;;  %vm1203_vm2 = vcmask 64512   ;;  %vm1857_vm3 = vcmask 130048   ;;  %vm1859_vm4 = vcmask 195584  }
  0x22   : > { %2212 = vmatpush3.msra.mxu0 %v216_v3  ;;  %2223 = vmatpush3.msra.mxu1 %v220_v4  ;;  %v213_v10 = vld [vmem:[%s2969_s1] sm:$0xff]  ;;  %v224_v13 = vld [vmem:[%s2969_s1 + $0x58] sm:$0xff]  ;;  %v223_v15 = vld [vmem:[%s2969_s1 + $0x50] sm:$0xff]  ;;  %vm1935_vm5 = vcmask 523264   ;;  %vm1937_vm6 = vcmask 785408   ;;  %s1980_s29 = sshll.u32 %s211_s28, 4  ;;  %s1981_s29 = int_to_ptr.vmem [resolvable:$true] %s1980_s29 }
  0x23   : > { %2213 = vmatprep.subr.mxu0 %v2513_v5  ;;  %2224 = vmatprep.subr.mxu1 %v2513_v5  ;;  %v217_v11 = vld [vmem:[%s2969_s1 + $0x20] sm:$0xff]  ;;  %v228_v14 = vld [vmem:[%s2969_s1 + $0x78] sm:$0xff]  ;;  %v227_v16 = vld [vmem:[%s2969_s1 + $0x70] sm:$0xff]  ;;  %s1966_s7 = scalar_lea.sflag [#allocation4], %s2608_s8  ;;  %s2451_s9 = scalar_lea.vmem %s1981_s29, 32 }
  0x24   : > { %2214 = vmatpush3.msra.mxu0 %v215_v6  ;;  %2225 = vmatpush3.msra.mxu1 %v219_v7  ;;  %v212_v12 = vld [vmem:[%s2635_s4] sm:$0xff]  ;;  %v222_v17 = vld [vmem:[%s2969_s1 + $0x48] sm:$0xff]  ;;  %v2062_v23 = vld [vmem:[%s2969_s1 + $0x90] sm:$0xff]  ;;  %p2452_p13 = scmp.ne.s32.totalorder %s1981_s29, %s2451_s9  ;;  %s2524_s10 = smov [#allocation3]  }
  0x25   : > { %2215 = vmatprep.subr.mxu0 %v2513_v5  ;;  %2226 = vmatprep.subr.mxu1 %v2513_v5  ;;  %v226_v18 = vld [vmem:[%s2969_s1 + $0x68] sm:$0xff]  ;;  %v221_v19 = vld [vmem:[%s2969_s1 + $0x40] sm:$0xff]  ;;  %v2063_v21 = vld [vmem:[%s2969_s1 + $0x98] sm:$0xff]  ;;  %s2455_s11 = sshll.u32 %s2524_s10, 4  ;;  %s2456_s11 = int_to_ptr.vmem [resolvable:$false] %s2455_s11 }
  0x26   : > { %2216 = vmatpush3.msra.mxu0 %v214_v8  ;;  %2227 = vmatpush3.msra.mxu1 %v218_v9  ;;  %v225_v20 = vld [vmem:[%s2969_s1 + $0x60] sm:$0xff]  ;;  %v2067_v22 = vld [vmem:[%s2969_s1 + $0xb8] sm:$0xff]  ;;  %v2066_v24 = vld [vmem:[%s2969_s1 + $0xb0] sm:$0xff]  ;;  %p2453_p0 = pnand %p2452_p13, %p2583_p6  ;;  %s2457_s16 = scalar_lea.vmem %s2456_s11, 64 }
  0x27   : > { %2217 = vmatprep.subr.mxu0 %v2513_v5  ;;  %2228 = vmatprep.subr.mxu1 %v2513_v5  ;;  %v2061_v25 = vld [vmem:[%s2969_s1 + $0x88] sm:$0xff]  ;;  %v2060_v27 = vld [vmem:[%s2969_s1 + $0x80] sm:$0xff]  ;;  %v2071_v30 = vld [vmem:[%s2969_s1 + $0xd8] sm:$0xff]  ;;  %p2458_p2 = scmp.lt.s32.totalorder %s1981_s29, %s2456_s11  ;;  %p2459_p3 = scmp.lt.s32.totalorder %s2457_s16, %s2451_s9 }
  0x28   : > { %2218 = vmatpush3.msra.mxu0 %v213_v10  ;;  %2219 = vmatprep.mubr.msk.f32.mxu0 %vm2514_vm1, %v2513_v5  ;;  %v2065_v26 = vld [vmem:[%s2969_s1 + $0xa8] sm:$0xff]  ;;  %v2064_v28 = vld [vmem:[%s2969_s1 + $0xa0] sm:$0xff]  ;;  %v2075_v31 = vld [vmem:[%s2969_s1 + $0xf8] sm:$0xff]  ;;  %p2454_p1 = pneg %p2453_p0 }
  0x29   : > { %2229 = vmatpush3.msra.mxu1 %v217_v11  ;;  %2220 = vmatmul.mubr.msk.f32.vlgmr.msra.gmra.mxu0 %vm257_vm0, %v212_v12  ;;  %v2059_v29 = vld [vmem:[%s2635_s4 + $0x8] sm:$0xff]  ;;  %v2070_v32 = vld [vmem:[%s2969_s1 + $0xd0] sm:$0xff]  ;;  %v2092_v38 = vld [vmem:[%s2969_s1 + $0x118] sm:$0xff]  ;;  %p2460_p4 = por %p2459_p3, %p2458_p2 }
  0x2a   : > { %2230 = vmatprep.mubr.msk.f32.mxu1 %vm2514_vm1, %v2513_v5  ;;  %2233 = vmatprep.subr.mxu0 %v2513_v5  ;;  %v2074_v33 = vld [vmem:[%s2969_s1 + $0xf0] sm:$0xff]  ;;  %v2069_v34 = vld [vmem:[%s2969_s1 + $0xc8] sm:$0xff]  ;;  %v2068_v36 = vld [vmem:[%s2969_s1 + $0xc0] sm:$0xff] }
  0x2b   : > { %2244 = vmatprep.subr.mxu1 %v2513_v5  ;;  %2231 = vmatmul.mubr.msk.f32.vlgmr.msra.gmra.mxu1 %vm257_vm0, %v212_v12  ;;  %v2073_v35 = vld [vmem:[%s2969_s1 + $0xe8] sm:$0xff]  ;;  %v2072_v37 = vld [vmem:[%s2969_s1 + $0xe0] sm:$0xff]  ;;  %v2096_v39 = vld [vmem:[%s2969_s1 + $0x138] sm:$0xff]  ;;  %p2461_p5 = pnand %p2460_p4, %p2454_p1 }
  0x2c   : > { %2234 = vmatpush3.msra.mxu0 %v224_v13  ;;  %2245 = vmatpush3.msra.mxu1 %v228_v14  ;;  %v2091_v40 = vld [vmem:[%s2969_s1 + $0x110] sm:$0xff]  ;;  %v2090_v42 = vld [vmem:[%s2969_s1 + $0x108] sm:$0xff]  ;;  %v2089_v44 = vld [vmem:[%s2969_s1 + $0x100] sm:$0xff] }
  0x2d   : > { %2235 = vmatprep.subr.mxu0 %v2513_v5  ;;  %2246 = vmatprep.subr.mxu1 %v2513_v5  ;;  %v2095_v41 = vld [vmem:[%s2969_s1 + $0x130] sm:$0xff]  ;;  %v2094_v43 = vld [vmem:[%s2969_s1 + $0x128] sm:$0xff]  ;;  %v2093_v45 = vld [vmem:[%s2969_s1 + $0x120] sm:$0xff] }
  0x2e   : > { %2236 = vmatpush3.msra.mxu0 %v223_v15  ;;  %2247 = vmatpush3.msra.mxu1 %v227_v16  ;;  %v2088_v46 = vld [vmem:[%s2635_s4 + $0x10] sm:$0xff]  ;;  %v2100_v47 = vld [vmem:[%s2969_s1 + $0x158] sm:$0xff]  ;;  %v2097_v53 = vld [vmem:[%s2969_s1 + $0x140] sm:$0xff]  ;;  %s2517_s4 = smov 24  }
  0x2f   : > { %2237 = vmatprep.subr.mxu0 %v2513_v5  ;;  %2248 = vmatprep.subr.mxu1 %v2513_v5  ;;  %v2104_v48 = vld [vmem:[%s2969_s1 + $0x178] sm:$0xff]  ;;  %v2099_v49 = vld [vmem:[%s2969_s1 + $0x150] sm:$0xff]  ;;  %v2098_v51 = vld [vmem:[%s2969_s1 + $0x148] sm:$0xff] }
  0x30   : > { %2238 = vmatpush3.msra.mxu0 %v222_v17  ;;  %2249 = vmatpush3.msra.mxu1 %v226_v18  ;;  %v2103_v50 = vld [vmem:[%s2969_s1 + $0x170] sm:$0xff]  ;;  %v2102_v52 = vld [vmem:[%s2969_s1 + $0x168] sm:$0xff]  ;;  %v2101_v54 = vld [vmem:[%s2969_s1 + $0x160] sm:$0xff] }
  0x31   : > { %2239 = vmatprep.subr.mxu0 %v2513_v5  ;;  %2250 = vmatprep.subr.mxu1 %v2513_v5  ;;  %v2080_v63 = vld [vmem:[%s2970_s2 + $0x4] ss:$0 sm:$0xff]  ;;  %v2081_v0 = vld [vmem:[%s2970_s2 + $0x5] ss:$0 sm:$0xff]  ;;  %v2051_v3 = vld [vmem:[%s2970_s2] ss:$0 sm:$0xff] }
  0x32   : > { %2240 = vmatpush3.msra.mxu0 %v221_v19  ;;  %2241 = vmatprep.mubr.msk.f32.mxu0 %vm2514_vm1, %v2513_v5  ;;  %v2052_v4 = vld [vmem:[%s2970_s2 + $0x1] ss:$0 sm:$0xff]  ;;  %v2083_v13 = vld [vmem:[%s2970_s2 + $0x7] ss:$0 sm:$0xff]  ;;  %v2053_v16 = vld [vmem:[%s2970_s2 + $0x2] ss:$0 sm:$0xff] }
  0x33   : > { %2251 = vmatpush3.msra.mxu1 %v225_v20  ;;  %2242 = vmatmul.mubr.msk.f32.vlgmr.msra.gmra.mxu0 %vm257_vm0, %v212_v12  ;;  %v2054_v17 = vld [vmem:[%s2970_s2 + $0x3] ss:$0 sm:$0xff] }
  0x34   : > { %2252 = vmatprep.mubr.msk.f32.mxu1 %vm2514_vm1, %v2513_v5  ;;  %2255 = vmatprep.subr.mxu0 %v2513_v5 }
  0x35   : > { %2266 = vmatprep.subr.mxu1 %v2513_v5  ;;  %2253 = vmatmul.mubr.msk.f32.vlgmr.msra.gmra.mxu1 %vm257_vm0, %v212_v12  ;;  %v2082_v12 = vld [vmem:[%s2970_s2 + $0x6] ss:$0 sm:$0xff] }
  0x36   : > { %2256 = vmatpush3.msra.mxu0 %v2063_v21  ;;  %2267 = vmatpush3.msra.mxu1 %v2067_v22 }
  0x37   : > { %2257 = vmatprep.subr.mxu0 %v2513_v5  ;;  %2268 = vmatprep.subr.mxu1 %v2513_v5 }
  0x38   : > { %2258 = vmatpush3.msra.mxu0 %v2062_v23  ;;  %2269 = vmatpush3.msra.mxu1 %v2066_v24  ;;  %v2109_v24 = vld [vmem:[%s2970_s2 + $0x8] ss:$0 sm:$0xff] }
  0x39   : > { %2259 = vmatprep.subr.mxu0 %v2513_v5  ;;  %2270 = vmatprep.subr.mxu1 %v2513_v5 }
  0x3a   : > { %2260 = vmatpush3.msra.mxu0 %v2061_v25  ;;  %2271 = vmatpush3.msra.mxu1 %v2065_v26  ;;  %v2110_v25 = vld [vmem:[%s2970_s2 + $0x9] ss:$0 sm:$0xff] }
  0x3b   : > { %2261 = vmatprep.subr.mxu0 %v2513_v5  ;;  %2272 = vmatprep.subr.mxu1 %v2513_v5 }
  0x3c   : > { %2262 = vmatpush3.msra.mxu0 %v2060_v27  ;;  %2263 = vmatprep.mubr.msk.f32.mxu0 %vm2514_vm1, %v2513_v5 }
  0x3d   : > { %2273 = vmatpush3.msra.mxu1 %v2064_v28  ;;  %2274 = vmatprep.mubr.msk.f32.mxu1 %vm2514_vm1, %v2513_v5 }
  0x3e   : > { %2264 = vmatmul.mubr.msk.f32.vlgmr.msra.gmra.mxu0 %vm257_vm0, %v2059_v29  ;;  %2275 = vmatmul.mubr.msk.f32.vlgmr.msra.gmra.mxu1 %vm257_vm0, %v2059_v29 }
  0x3f   : > { %2277 = vmatprep.subr.mxu0 %v2513_v5  ;;  %2288 = vmatprep.subr.mxu1 %v2513_v5 }
  0x40   : > { %2278 = vmatpush3.msra.mxu0 %v2071_v30  ;;  %2289 = vmatpush3.msra.mxu1 %v2075_v31 }
  0x41   : > { %2279 = vmatprep.subr.mxu0 %v2513_v5  ;;  %2290 = vmatprep.subr.mxu1 %v2513_v5 }
  0x42   : > { %2280 = vmatpush3.msra.mxu0 %v2070_v32  ;;  %2291 = vmatpush3.msra.mxu1 %v2074_v33 }
  0x43   : > { %2281 = vmatprep.subr.mxu0 %v2513_v5  ;;  %2292 = vmatprep.subr.mxu1 %v2513_v5 }
  0x44   : > { %2282 = vmatpush3.msra.mxu0 %v2069_v34  ;;  %2293 = vmatpush3.msra.mxu1 %v2073_v35 }
  0x45   : > { %2283 = vmatprep.subr.mxu0 %v2513_v5  ;;  %2294 = vmatprep.subr.mxu1 %v2513_v5 }
  0x46   : > { %2284 = vmatpush3.msra.mxu0 %v2068_v36  ;;  %2285 = vmatprep.mubr.msk.f32.mxu0 %vm2514_vm1, %v2513_v5 }
  0x47   : > { %2295 = vmatpush3.msra.mxu1 %v2072_v37  ;;  %2296 = vmatprep.mubr.msk.f32.mxu1 %vm2514_vm1, %v2513_v5 }
  0x48   : > { %2286 = vmatmul.mubr.msk.f32.vlgmr.msra.gmra.mxu0 %vm257_vm0, %v2059_v29  ;;  %2297 = vmatmul.mubr.msk.f32.vlgmr.msra.gmra.mxu1 %vm257_vm0, %v2059_v29 }
  0x49   : > { %2299 = vmatprep.subr.mxu0 %v2513_v5  ;;  %2310 = vmatprep.subr.mxu1 %v2513_v5 }
  0x4a   : > { %2307 = vmatprep.mubr.msk.f32.mxu0 %vm2514_vm1, %v2513_v5  ;;  %2318 = vmatprep.mubr.msk.f32.mxu1 %vm2514_vm1, %v2513_v5 }
  0x4b   : > { %2300 = vmatpush3.msra.mxu0 %v2092_v38  ;;  %2311 = vmatpush3.msra.mxu1 %v2096_v39 }
  0x4c   : > { %2301 = vmatprep.subr.mxu0 %v2513_v5  ;;  %2312 = vmatprep.subr.mxu1 %v2513_v5 }
  0x4d   : > { %2302 = vmatpush3.msra.mxu0 %v2091_v40  ;;  %2313 = vmatpush3.msra.mxu1 %v2095_v41 }
  0x4e   : > { %2303 = vmatprep.subr.mxu0 %v2513_v5  ;;  %2314 = vmatprep.subr.mxu1 %v2513_v5 }
  0x4f   : > { %2304 = vmatpush3.msra.mxu0 %v2090_v42  ;;  %2315 = vmatpush3.msra.mxu1 %v2094_v43 }
  0x50   : > { %2305 = vmatprep.subr.mxu0 %v2513_v5  ;;  %2316 = vmatprep.subr.mxu1 %v2513_v5 }
  0x51   : > { %2306 = vmatpush3.msra.mxu0 %v2089_v44  ;;  %2317 = vmatpush3.msra.mxu1 %v2093_v45 }
  0x52   : > { %2321 = vmatprep.subr.mxu0 %v2513_v5  ;;  %2332 = vmatprep.subr.mxu1 %v2513_v5 }
  0x53   : > { %2308 = vmatmul.mubr.msk.f32.vlgmr.msra.gmra.mxu0 %vm257_vm0, %v2088_v46  ;;  %2319 = vmatmul.mubr.msk.f32.vlgmr.msra.gmra.mxu1 %vm257_vm0, %v2088_v46 }
  0x54   : > { %2322 = vmatpush3.msra.mxu0 %v2100_v47  ;;  %2333 = vmatpush3.msra.mxu1 %v2104_v48 }
  0x55   : > { %2323 = vmatprep.subr.mxu0 %v2513_v5  ;;  %2334 = vmatprep.subr.mxu1 %v2513_v5 }
  0x56   : > { %2324 = vmatpush3.msra.mxu0 %v2099_v49  ;;  %2335 = vmatpush3.msra.mxu1 %v2103_v50 }
  0x57   : > { %2325 = vmatprep.subr.mxu0 %v2513_v5  ;;  %2336 = vmatprep.subr.mxu1 %v2513_v5 }
  0x58   : > { %2326 = vmatpush3.msra.mxu0 %v2098_v51  ;;  %2337 = vmatpush3.msra.mxu1 %v2102_v52 }
  0x59   : > { %2327 = vmatprep.subr.mxu0 %v2513_v5  ;;  %2338 = vmatprep.subr.mxu1 %v2513_v5 }
  0x5a   : > { %2329 = vmatprep.mubr.msk.f32.mxu0 %vm2514_vm1, %v2513_v5  ;;  %2340 = vmatprep.mubr.msk.f32.mxu1 %vm2514_vm1, %v2513_v5 }
  0x5b   : > { %2328 = vmatpush3.msra.mxu0 %v2097_v53  ;;  %2339 = vmatpush3.msra.mxu1 %v2101_v54 }
  0x5c   : > { %2330 = vmatmul.mubr.msk.f32.vlgmr.msra.gmra.mxu0 %vm257_vm0, %v2088_v46  ;;  %2341 = vmatmul.mubr.msk.f32.vlgmr.msra.gmra.mxu1 %vm257_vm0, %v2088_v46 }
  0x5d   : > { %2343 = vmatprep.subr.mxu0 %v2513_v5  ;;  %2348 = vmatprep.subr.mxu1 %v2513_v5 }
  0x5e   : > { %2345 = vmatprep.mubr.msk.f32.mxu0 %vm2514_vm1, %v2513_v5  ;;  %2350 = vmatprep.mubr.msk.f32.mxu1 %vm2514_vm1, %v2513_v5 }
  0xe9   : > { %v327_v55 = vpop.f32.mrf.mxu0 }
  0xea   : > { %v328_v10 = vadd.f32 %v2051_v3, %v327_v55 }
  0xeb   : > { %v2221_v56 = vpop.f32.mrf.mxu0  ;;  %v397_v57 = vpop.f32.mrf.mxu1 }
  0xec   : > { %v398_v11 = vadd.f32 %v2052_v4, %v397_v57 }
  0xed   : > { %v2232_v58 = vpop.f32.mrf.mxu1 }
  0xf3   : > { %v467_v59 = vpop.f32.mrf.mxu0 }
  0xf4   : > { %v468_v22 = vadd.f32 %v2053_v16, %v467_v59 }
  0xf5   : > { %v2243_v60 = vpop.f32.mrf.mxu0  ;;  %v537_v61 = vpop.f32.mrf.mxu1 }
  0xf6   : > { %v538_v23 = vadd.f32 %v2054_v17, %v537_v61 }
  0xf7   : > { %v2254_v62 = vpop.f32.mrf.mxu1 }
  0xfe   : > { %v658_v1 = vpop.f32.mrf.mxu0  ;;  %v728_v2 = vpop.f32.mrf.mxu1 }
  0xff   : > { %v659_v6 = vadd.f32 %v2080_v63, %v658_v1  ;;  %v729_v7 = vadd.f32 %v2081_v0, %v728_v2 }
 0x100   : > { %v2265_v8 = vpop.f32.mrf.mxu0  ;;  %v2276_v9 = vpop.f32.mrf.mxu1 }
 0x101   : > { %2344 = vmatpush3.xpose.msk.msra.mxu0 %vm1203_vm2, %v659_v6  ;;  %2349 = vmatpush3.xpose.msk.msra.mxu1 %vm1203_vm2, %v729_v7  ;;  %v2111_v8 = vld [vmem:[%s2970_s2 + $0xa] ss:$0 sm:$0xff] }
 0x102   : > { %2353 = vmatprep.subr.mxu0 %v2513_v5  ;;  %2358 = vmatprep.subr.mxu1 %v2513_v5 }
 0x104   : > { %2346 = vmatmul.mubr.msk.f32.vlgmr.msra.gmra.mxu0 %vm1203_vm2, %v328_v10  ;;  %2351 = vmatmul.mubr.msk.f32.vlgmr.msra.gmra.mxu1 %vm1203_vm2, %v398_v11 }
 0x105   : > { %2355 = vmatprep.mubr.msk.f32.mxu0 %vm2514_vm1, %v2513_v5  ;;  %2360 = vmatprep.mubr.msk.f32.mxu1 %vm2514_vm1, %v2513_v5 }
 0x108   : > { %v798_v14 = vpop.f32.mrf.mxu0  ;;  %v868_v15 = vpop.f32.mrf.mxu1 }
 0x109   : > { %v799_v18 = vadd.f32 %v2082_v12, %v798_v14  ;;  %v869_v19 = vadd.f32 %v2083_v13, %v868_v15  ;;  %v2112_v13 = vld [vmem:[%s2970_s2 + $0xb] ss:$0 sm:$0xff] }
 0x10a   : > { %v2287_v20 = vpop.f32.mrf.mxu0  ;;  %v2298_v21 = vpop.f32.mrf.mxu1 }
 0x10b   : > { %2354 = vmatpush3.xpose.msk.msra.mxu0 %vm1203_vm2, %v799_v18  ;;  %2359 = vmatpush3.xpose.msk.msra.mxu1 %vm1203_vm2, %v869_v19 }
 0x10c   : > { %2363 = vmatprep.subr.mxu0 %v2513_v5  ;;  %2368 = vmatprep.subr.mxu1 %v2513_v5 }
 0x10e   : > { %2356 = vmatmul.mubr.msk.f32.vlgmr.msra.gmra.mxu0 %vm1203_vm2, %v468_v22  ;;  %2361 = vmatmul.mubr.msk.f32.vlgmr.msra.gmra.mxu1 %vm1203_vm2, %v538_v23 }
 0x10f   : > { %2365 = vmatprep.mubr.msk.f32.mxu0 %vm2514_vm1, %v2513_v5  ;;  %2370 = vmatprep.mubr.msk.f32.mxu1 %vm2514_vm1, %v2513_v5 }
 0x113   : > { %v989_v26 = vpop.f32.mrf.mxu0  ;;  %v1059_v27 = vpop.f32.mrf.mxu1 }
 0x114   : > { %v990_v28 = vadd.f32 %v2109_v24, %v989_v26  ;;  %v1060_v29 = vadd.f32 %v2110_v25, %v1059_v27 }
 0x115   : > { %v2309_v30 = vpop.f32.mrf.mxu0  ;;  %v2320_v31 = vpop.f32.mrf.mxu1 }
 0x116   : > { %2364 = vmatpush3.msra.mxu0 %v990_v28  ;;  %2369 = vmatpush3.msra.mxu1 %v1060_v29  ;;  %v2518_v29 = vmov 1983009808   ;;  %v1865_v31 = vlaneseq }
 0x117   : > { %2373 = vmatprep.subr.mxu0 %v2513_v5  ;;  %2378 = vmatprep.subr.mxu1 %v2513_v5  ;;  %v1863_v30 = vunpack.c.l.s4 %v2518_v29 }
 0x118   : > { %vm1962_vm7 = vcmp.lt.s32.totalorder %v1865_v31, 256 }
 0x11c   : > { %v1129_v32 = vpop.f32.mrf.mxu0  ;;  %v2896_v33 = vpop.f32.mrf.mxu1 }
 0x11d   : > { %v1130_v12 = vadd.f32 %v2111_v8, %v1129_v32  ;;  %v1200_v16 = vadd.f32 %v2112_v13, %v2896_v33  ;;  %v2519_v32 = vmov 1934713408  }
 0x11e   : > { %v2331_v34 = vpop.f32.mrf.mxu0  ;;  %v2342_v35 = vpop.f32.mrf.mxu1  ;;  %v1878_v33 = vunpack.c.l.s4 %v2519_v32 }
 0x11f   : > { %v1864_v34 = vunpack.c.0.s8 %v1863_v30  ;;  %v1866_v35 = vshrl.u32 %v1865_v31, 7 }
 0x1c4   : > { %v1276_v36 = vpop.f32.mrf.mxu0  ;;  %v1352_v37 = vpop.f32.mrf.mxu1 }
 0x1c5   : > { %v1508_v38 = vsel %vm1203_vm2, %v1276_v36, -inf  ;;  %v1511_v41 = vsel %vm1203_vm2, %v1352_v37, -inf }
 0x1c6   : > { %v2352_v39 = vpop.f32.mrf.mxu1  ;;  %1509 = vmax.xlane.f32.xlu0 %v1508_v38  ;;  %v2347_v40 = vpop.f32.mrf.mxu0  ;;  %v1879_v38 = vunpack.c.0.s8 %v1878_v33 }
 0x1c7   : > { %v1867_v39 = vsub.s32 %v1864_v34, %v1866_v35 }
 0x1ca   : > { %1512 = vmax.xlane.f32.xlu0 %v1511_v41 }
 0x1ce   : > { %v1428_v42 = vpop.f32.mrf.mxu0  ;;  %v1504_v43 = vpop.f32.mrf.mxu1 }
 0x1cf   : > { %v1514_v44 = vsel %vm1203_vm2, %v1428_v42, -inf  ;;  %v1517_v47 = vsel %vm1203_vm2, %v1504_v43, -inf }
 0x1d0   : > { %v2362_v45 = vpop.f32.mrf.mxu1  ;;  %1515 = vmax.xlane.f32.xlu1 %v1514_v44  ;;  %v2357_v46 = vpop.f32.mrf.mxu0 }
 0x1d4   : > { %1518 = vmax.xlane.f32.xlu1 %v1517_v47 }
 0x24f   : > { %v1510_v48 = vpop.xlane.xlu0 %1509 }
 0x250   : > { %v1520_v49 = vsub.f32 %v1276_v36, %v1510_v48 }
 0x252   : > { %v1524_v50 = vmul.f32 1.442695, %v1520_v49 }
 0x253   : > { %v1513_v51 = vpop.xlane.xlu0 %1512 }
 0x254   : > { %2435 = vpow2.f32 %v1524_v50  ;;  %v1521_v52 = vsub.f32 %v1352_v37, %v1513_v51 }
 0x256   : > { %v1526_v53 = vmul.f32 1.442695, %v1521_v52 }
 0x258   : > { %2437 = vpow2.f32 %v1526_v53 }
 0x259   : > { %v1516_v54 = vpop.xlane.xlu1 %1515 }
 0x25a   : > { %v1522_v55 = vsub.f32 %v1428_v42, %v1516_v54  ;;  %v1882_v42 = vsub.s32 %v1879_v38, %v1866_v35 }
 0x25c   : > { %v1528_v56 = vmul.f32 1.442695, %v1522_v55 }
 0x25d   : > { %v1519_v57 = vpop.xlane.xlu1 %1518 }
 0x25e   : > { %2439 = vpow2.f32 %v1528_v56  ;;  %v1523_v58 = vsub.f32 %v1504_v43, %v1519_v57 }
 0x260   : > { %v1530_v59 = vmul.f32 1.442695, %v1523_v58 }
 0x261   : > { %v2436_v60 = vpop.eup %2435 }
 0x262   : > { %2441 = vpow2.f32 %v1530_v59  ;;  %v1532_v61 = vsel %vm1203_vm2, %v2436_v60, 0.0 }
 0x263   : > { %1533 = vadd.xlane.f32.xlu0 %v1532_v61 }
 0x265   : > { %v2438_v62 = vpop.eup %2437 }
 0x266   : > { %v1535_v63 = vsel %vm1203_vm2, %v2438_v62, 0.0 }
 0x267   : > { %1536 = vadd.xlane.f32.xlu1 %v1535_v63 }
 0x26b   : > { %v2440_v0 = vpop.eup %2439 }
 0x26c   : > { %v1538_v1 = vsel %vm1203_vm2, %v2440_v0, 0.0 }
 0x26d   : > { %1539 = vadd.xlane.f32.xlu0 %v1538_v1 }
 0x26f   : > { %v2442_v2 = vpop.eup %2441 }
 0x270   : > { %v1541_v3 = vsel %vm1203_vm2, %v2442_v2, 0.0 }
 0x271   : > { %1542 = vadd.xlane.f32.xlu1 %v1541_v3 }
 0x2ec   : > { %v1534_v4 = vpop.xlane.xlu0 %1533 }
 0x2ed   : > { %2443 = vrcp.f32 %v1534_v4 }
 0x2f0   : > { %v1537_v6 = vpop.xlane.xlu1 %1536 }
 0x2f1   : > { %2445 = vrcp.f32 %v1537_v6 }
 0x2f6   : > { %v1540_v7 = vpop.xlane.xlu0 %1539 }
 0x2f7   : > { %2447 = vrcp.f32 %v1540_v7 }
 0x2fa   : > { %v2444_v9 = vpop.eup %2443  ;;  %v1543_v10 = vpop.xlane.xlu1 %1542 }
 0x2fb   : > { %2449 = vrcp.f32 %v1543_v10  ;;  %v1548_v11 = vmul.f32 %v2444_v9, %v2436_v60  ;;  %v2523_v60 = vmov 1966171168  }
 0x2fc   : > { %v1946_v61 = vunpack.c.l.s4 %v2523_v60 }
 0x2fd   : > { %2366 = vmatmul.mubr.msk.f32.vlgmr.msra.gmra.mxu0 %vm1203_vm2, %v1548_v11 }
 0x2fe   : > { %v2446_v14 = vpop.eup %2445  ;;  %2374 = vmatpush3.msra.mxu0 %v1130_v12  ;;  %2375 = vmatprep.mubr.msk.f32.mxu0 %vm2514_vm1, %v2513_v5 }
 0x2ff   : > { %v1549_v15 = vmul.f32 %v2446_v14, %v2438_v62 }
 0x301   : > { %2371 = vmatmul.mubr.msk.f32.vlgmr.msra.gmra.mxu1 %vm1203_vm2, %v1549_v15 }
 0x302   : > { %2379 = vmatpush3.msra.mxu1 %v1200_v16  ;;  %2380 = vmatprep.mubr.msk.f32.mxu1 %vm2514_vm1, %v2513_v5 }
 0x304   : > { %v2448_v17 = vpop.eup %2447 }
 0x305   : > { %v1550_v18 = vmul.f32 %v2448_v17, %v2440_v0  ;;  %v1947_v0 = vunpack.c.0.s8 %v1946_v61 }
 0x307   : > { %2376 = vmatmul.mubr.msk.f32.vlgmr.msra.gmra.mxu0 %vm1203_vm2, %v1550_v18  ;;  %v1950_v6 = vsub.s32 %v1947_v0, %v1866_v35 }
 0x308   : > { %v2450_v19 = vpop.eup %2449 }
 0x309   : > { %v1551_v20 = vmul.f32 %v2450_v19, %v2442_v2 }
 0x30b   : > { %2381 = vmatmul.mubr.msk.f32.vlgmr.msra.gmra.mxu1 %vm1203_vm2, %v1551_v20 }
 0x3bd   : > { %v1621_v21 = vpop.f32.mrf.mxu0 }
 0x3bf   : > { %v2367_v22 = vpop.f32.mrf.mxu0 }
 0x3c1   : > { %v1694_v23 = vpop.f32.mrf.mxu1 }
 0x3c2   : > { %1845 = vrot.lane.b32.xlu0 %v1694_v23, %s2515_s17 }
 0x3c3   : > { %v2372_v24 = vpop.f32.mrf.mxu1 }
 0x3c7   : > { %v1767_v25 = vpop.f32.mrf.mxu0 }
 0x3c8   : > { %1849 = vrot.lane.b32.xlu1 %v1767_v25, %s2516_s19 }
 0x3c9   : > { %v2377_v26 = vpop.f32.mrf.mxu0 }
 0x3cb   : > { %v1840_v27 = vpop.f32.mrf.mxu1 }
 0x3cc   : > { %1853 = vrot.lane.b32.xlu1 %v1840_v27, %s2517_s4 }
 0x3cd   : > { %v2382_v28 = vpop.f32.mrf.mxu1 }
 0x434   : > { %v1846_v36 = vpop.permute.xlu0 %1845 }
 0x435   : > { %v1856_v40 = vsel %vm1203_vm2, %v1621_v21, %v1846_v36 }
 0x43a   : > { %v1850_v37 = vpop.permute.xlu1 %1849 }
 0x43b   : > { %v1858_v41 = vsel %vm1857_vm3, %v1856_v40, %v1850_v37 }
 0x43e   : > { %v1854_v43 = vpop.permute.xlu1 %1853 }
 0x43f   : > { %v1860_v44 = vsel %vm1859_vm4, %v1858_v41, %v1854_v43 }
 0x440   : > { %v1861_v45 = vcombine.high %v1860_v44, %v2513_v5  ;;  %v1868_v46 = vrot.slane %v1860_v44, %v1867_v39 }
 0x442   : > { %v1875_v47 = vrot.slane %v1861_v45, %v1867_v39  ;;  %v1883_v48 = vrot.slane %v1868_v46, %v1882_v42  ;;  %v1876_v49 = vcombine.high %v1868_v46, %v2513_v5 }
 0x444   : > { %v1906_v50 = vcombine.high %v1883_v48, %v2513_v5  ;;  %v1898_v51 = vrot.slane %v1875_v47, %v1882_v42  ;;  %v1891_v53 = vcombine.high %v1875_v47, %v2513_v5  ;;  %v1890_v54 = vrot.slane %v1876_v49, %v1882_v42 }
 0x446   : > { %1911 = vrot.lane.b32.xlu1 %v1906_v50, %s2520_s20  ;;  %v1908_v52 = vcombine.high %v1898_v51, %v2513_v5  ;;  %v1905_v55 = vrot.slane %v1891_v53, %v1882_v42  ;;  %v1907_v56 = vcombine.high %v1890_v54, %v2513_v5 }
 0x448   : > { %1923 = vrot.lane.b32.xlu0 %v1908_v52, %s2520_s20  ;;  %v1909_v57 = vcombine.high %v1905_v55, %v2513_v5 }
 0x44a   : > { %1915 = vrot.lane.b32.xlu1 %v1890_v54, %s2521_s24 }
 0x44c   : > { %1927 = vrot.lane.b32.xlu0 %v1905_v55, %s2521_s24 }
 0x44e   : > { %1919 = vrot.lane.b32.xlu1 %v1907_v56, %s2522_s25 }
 0x450   : > { %1931 = vrot.lane.b32.xlu0 %v1909_v57, %s2522_s25 }
 0x4b8   : > { %v1912_v58 = vpop.permute.xlu1 %1911 }
 0x4b9   : > { %v1934_v2 = vsel %vm257_vm0, %v1883_v48, %v1912_v58 }
 0x4ba   : > { %v1924_v59 = vpop.permute.xlu0 %1923 }
 0x4bb   : > { %v1939_v3 = vsel %vm257_vm0, %v1898_v51, %v1924_v59 }
 0x4bc   : > { %v1916_v62 = vpop.permute.xlu1 %1915 }
 0x4bd   : > { %v1936_v4 = vsel %vm1935_vm5, %v1934_v2, %v1916_v62 }
 0x4be   : > { %v1928_v63 = vpop.permute.xlu0 %1927 }
 0x4bf   : > { %v1940_v5 = vsel %vm1935_vm5, %v1939_v3, %v1928_v63 }
 0x4c0   : > { %v1920_v1 = vpop.permute.xlu1 %1919 }
 0x4c1   : > { %v1938_v8 = vsel %vm1937_vm6, %v1936_v4, %v1920_v1 }
 0x4c2   : > { %v1932_v7 = vpop.permute.xlu0 %1931 }
 0x4c3   : > { %v1941_v9 = vsel %vm1937_vm6, %v1940_v5, %v1932_v7 }
 0x4c4   : > { %v1944_v10 = vcombine.low %v1938_v8, %v1941_v9 }
 0x4c6   : > { %v1951_v11 = vrot.slane %v1944_v10, %v1950_v6 }
 0x4c8   : > { %v1958_v12 = vrot.slane %v1951_v11, %v1950_v6 }
 0x4ca   : > { %1964 = vst.msk [vmem:[%s211_s28] sm:$0x3] %vm1962_vm7, %v1958_v12 }
 0x4cb   : > { %2464 = shalt.err (!%p2461_p5)
}
 0x4cc   : > { %s2465_s17 = scalar_lea.hbm %s1978_s6, 32  ;;  %s2469_s4 = scalar_lea.hbm %s2971_s3, 64 }
 0x4cd   : > { %p2466_p7 = scmp.ne.s32.totalorder %s1978_s6, %s2465_s17  ;;  %p2470_p12 = scmp.lt.s32.totalorder %s1978_s6, %s2971_s3 }
 0x4ce   : > { %p2471_p13 = scmp.lt.s32.totalorder %s2469_s4, %s2465_s17 }
 0x4cf   : > { %p2467_p10 = pnand %p2466_p7, %p2583_p6 }
 0x4d0   : > { %p2472_p0 = por %p2471_p13, %p2470_p12 }
 0x4d1   : > { %p2468_p11 = pneg %p2467_p10 }
 0x4d3   : > { %p2473_p9 = pnand %p2472_p0, %p2468_p11 }
 0x4d5   : > { %2476 = shalt.err (!%p2473_p9)
}
 0x4d6   : > { %2385 = dma.vmem_to_hbm [thread:$0]  (%p2583_p6), %s1981_s29, 32, %s1978_s6, %s1966_s7  }
 0x4d7 PF: > { %s1992_s25 = sand.u32 1, %s2499_s12   ;;  %p2975_p1 = scmp.ge.s32.totalorder %s2511_s15, 2 }
 0x4d8   : > { %s1993_s26 = scalar_lea.sflag [#allocation4], %s1992_s25 }
 0x4d9   : > { %p2388_p2 = pnand %p2975_p1, %p2587_p8 }
 0x4db   : > { %p2389_p3 = pneg %p2388_p2 }
 0x4dd   : > { %2494 = dma.done.wait (%p2389_p3), %s1993_s26, 32  }
 0x4de   : > { %2496 = vsyncadd (%p2389_p3), %s1993_s26, 4294967264  ;;  %p13_p9 = scmp.ge.s32.totalorder %s2568_s18, 4   ;;  %s2976_s12 = smov %s2503_s13 }
 0x4df   : > { %s2977_s13 = smov %s2507_s14  ;;  %s2978_s14 = smov %s2581_s21 }
 0x4e0   : > { %s2979_s15 = smov %s2568_s18  ;;  %15 = sbr.rel (!%p13_p9) target bundleno = 3 (0x3), region = 116 }
 0x4e5   :  { %1998 = vsyncpa [#allocation4], 1 }
 0x4e6   :  { %2000 = vsyncpa [#allocation4 + $0x1], 1 }

</bundles_post_ra>
